<compile_context>
chip_gen: v7x
topology: tpu7x:2x2x1
jax: 0.10.0
libtpu: 0.0.40
codegen_flags: <defaults>
</compile_context>

<pallas_src>
import functools
import math

import jax
import jax.numpy as jnp
from jax.experimental import pallas as pl
from jax.experimental.pallas import tpu as pltpu


def _label_smoothing_kernel(tgt_ref, x_ref, stats_ref, *,
                            padding_idx, smooth_val, coeff_t, const_row):
    """Per-tile closed-form smoothed-KL partial sums.

    tgt_ref:   (TN, 1)   int32 targets (padding_idx marks ignored rows)
    x_ref:     (TN, V)   logits tile (input dtype; bf16 OK)
    stats_ref: (1, 8, 128) f32; [0,0,0] = partial loss sum, [0,1,0] = count.
    """
    x_orig = x_ref[...]                              # (TN, V), input dtype
    tgt = tgt_ref[...]                               # (TN, 1), int32
    tn, v = x_orig.shape

    # Row max in the input dtype (max is exact in bf16); upcast afterwards.
    m = jnp.max(x_orig, axis=-1, keepdims=True).astype(jnp.float32)   # (TN,1)

    # log_softmax pieces in f32 (precision-critical chain stays f32).
    x = x_orig.astype(jnp.float32)
    z = x - m                                                         # (TN,V)
    lse = jnp.log(jnp.sum(jnp.exp(z), axis=-1, keepdims=True))        # (TN,1)
    # sum_j logp_j = sum_j z_j - V * lse
    sum_logp = jnp.sum(z, axis=-1, keepdims=True) - jnp.float32(v) * lse

    # x[target] via a one-hot select on the ORIGINAL dtype tile (exact: each
    # row has exactly one nonzero summand).  No tgt_safe pass is needed:
    # ignored rows are zeroed by the final select regardless of what (if
    # anything) the compare matches.
    col = jax.lax.broadcasted_iota(jnp.int32, (tn, v), 1)
    x_t = jnp.sum(jnp.where(col == tgt, x_orig, jnp.zeros_like(x_orig)),
                  axis=-1, keepdims=True).astype(jnp.float32)          # (TN,1)
    logp_t = (x_t - m) - lse

    ignore = tgt == padding_idx                       # (TN, 1) bool
    row_kl = (jnp.float32(const_row)
              - jnp.float32(smooth_val) * sum_logp
              - jnp.float32(coeff_t) * logp_t)
    # NOTE: select (not multiply-by-mask) — ragged-tail rows may hold NaN/Inf.
    row_loss = jnp.where(ignore, jnp.float32(0.0), row_kl)

    tile_sum = jnp.sum(row_loss)                                       # scalar
    tile_cnt = jnp.sum(jnp.where(ignore, jnp.float32(0.0), jnp.float32(1.0)))

    # Pack the two scalars into a properly tiled (1, 8, 128) output block.
    srow = jax.lax.broadcasted_iota(jnp.int32, stats_ref.shape, 1)
    slane = jax.lax.broadcasted_iota(jnp.int32, stats_ref.shape, 2)
    stats = jnp.where((srow == 0) & (slane == 0), tile_sum, jnp.float32(0.0))
    stats = jnp.where((srow == 1) & (slane == 0), tile_cnt, stats)
    stats_ref[...] = stats


def _default_vmem_limit():
    """32 MiB, capped at half of physical VMEM (v7x has only 64 MiB/TC)."""
    cap = None
    try:
        info = pltpu.get_tpu_info()
        cap = getattr(info, "vmem_capacity_bytes", None)
    except Exception:   # not on TPU / API drift — fall back conservatively
        cap = None
    if cap:
        return min(32 * 1024 * 1024, int(cap) // 2)
    return 32 * 1024 * 1024


def label_smoothing_loss(x, target, *, size, padding_idx, smoothing,
                         normalize_length=False, tile_rows=None,
                         block_budget_bytes=None,
                         vmem_limit_bytes=None,
                         logits_buffer_count=2):
    """Forward pass of espnet LabelSmoothingLoss (KLDivLoss criterion)."""
    batch, seqlen, v = x.shape
    assert v == size
    n = batch * seqlen

    xf = x.reshape(n, v)                        # keep input dtype (bf16 OK)
    tgt = target.reshape(n).astype(jnp.int32)

    itemsize = jnp.dtype(x.dtype).itemsize
    sub = max(8, 32 // itemsize)                # sublane tile: 8 f32 / 16 bf16
    n_ceil = ((n + sub - 1) // sub) * sub

    if vmem_limit_bytes is None:
        vmem_limit_bytes = _default_vmem_limit()
    if block_budget_bytes is None:
        # Total pipeline-footprint budget (NOT just one logits block).
        block_budget_bytes = min(16 * 1024 * 1024, vmem_limit_bytes // 2)

    if tile_rows is None:
        v_pad = ((v + 127) // 128) * 128
        # Per-row VMEM cost: 2 pipeline buffers of the logits block in the
        # input dtype + ~4 full-tile f32 intermediates (upcast/z/exp/one-hot)
        # + the small (rows,1) column blocks (lane-padded to 128).
        bytes_per_row = v_pad * (2 * itemsize + 4 * 4) + 4 * 128 * 4
        tile_rows = block_budget_bytes // bytes_per_row
        # Keep >= ~8 grid steps so the DMA pipeline actually overlaps and
        # (on v7x) both TensorCores get work on the "parallel" axis.
        target_rows = (n_ceil + 7) // 8
        pipeline_cap = ((target_rows + sub - 1) // sub) * sub
        tile_rows = min(int(tile_rows), pipeline_cap)
    tile_rows = max(sub, min(int(tile_rows) // sub * sub, n_ceil))

    n_tiles = pl.cdiv(n, tile_rows)
    n_pad = n_tiles * tile_rows

    # Only pad the tiny target array; x stays unpadded in HBM.  Rows past n in
    # the ragged last x block read unspecified data but are masked in-kernel
    # because the padded target rows carry padding_idx (see INVARIANT above).
    tgt2 = jnp.pad(tgt, (0, n_pad - n),
                   constant_values=padding_idx).reshape(n_pad, 1)

    confidence = 1.0 - smoothing
    smooth_val = smoothing / (size - 1)
    c_term = confidence * math.log(confidence) if confidence > 0.0 else 0.0
    s_term = ((size - 1) * smooth_val * math.log(smooth_val)
              if smooth_val > 0.0 else 0.0)

    kernel = functools.partial(
        _label_smoothing_kernel,
        padding_idx=padding_idx,
        smooth_val=smooth_val,
        coeff_t=confidence - smooth_val,
        const_row=c_term + s_term)

    # Optional deeper buffering of the logits stream only (use if the DMA is
    # exposed after shrinking the block); default 2 keeps the vanilla path.
    if logits_buffer_count != 2:
        x_spec = pl.BlockSpec((tile_rows, v), lambda i: (i, 0),
                              pipeline_mode=pl.Buffered(logits_buffer_count))
    else:
        x_spec = pl.BlockSpec((tile_rows, v), lambda i: (i, 0))

    stats = pl.pallas_call(
        kernel,
        out_shape=jax.ShapeDtypeStruct((n_tiles, 8, 128), jnp.float32),
        grid=(n_tiles,),
        in_specs=[
            pl.BlockSpec((tile_rows, 1), lambda i: (i, 0)),
            x_spec,
        ],
        out_specs=pl.BlockSpec((1, 8, 128), lambda i: (i, 0, 0)),
        compiler_params=pltpu.CompilerParams(
            dimension_semantics=("parallel",),
            vmem_limit_bytes=vmem_limit_bytes),
    )(tgt2, xf)

    loss_sum = jnp.sum(stats[:, 0, 0])          # per-tile partial sums
    if normalize_length:
        denom = jnp.sum(stats[:, 1, 0])         # per-tile valid-token counts
    else:
        denom = jnp.float32(batch)
    return loss_sum / denom


def _reference_loss(x, target, size, padding_idx, smoothing, normalize_length):
    """Pure-JAX replica of the PyTorch forward, for verification."""
    batch = x.shape[0]
    xf = x.reshape(-1, size).astype(jnp.float32)
    tf = target.reshape(-1)
    ignore = tf == padding_idx
    total = xf.shape[0] - jnp.sum(ignore)
    tsafe = jnp.where(ignore, 0, tf)
    true_dist = jnp.full_like(xf, smoothing / (size - 1))
    true_dist = true_dist.at[jnp.arange(xf.shape[0]), tsafe].set(1.0 - smoothing)
    logp = jax.nn.log_softmax(xf, axis=1)
    kl = jnp.where(true_dist > 0, true_dist * (jnp.log(true_dist) - logp), 0.0)
    kl = jnp.where(ignore[:, None], 0.0, kl)
    denom = total if normalize_length else batch
    return jnp.sum(kl) / denom


if __name__ == "__main__":
    padding_idx = -1
    smoothing = 0.1

    # Case 1: default tiling, normalize_length=False.
    batch, seqlen, size = 2, 8, 32
    key = jax.random.PRNGKey(0)
    kx, kt = jax.random.split(key)
    x = jax.random.normal(kx, (batch, seqlen, size), dtype=jnp.float32)
    target = jax.random.randint(kt, (batch, seqlen), 0, size, dtype=jnp.int32)
    target = target.at[0, :2].set(padding_idx)
    target = target.at[1, -1].set(padding_idx)

    out = label_smoothing_loss(x, target, size=size, padding_idx=padding_idx,
                               smoothing=smoothing, normalize_length=False)
    out = jax.block_until_ready(out)
    ref = _reference_loss(x, target, size, padding_idx, smoothing, False)
    assert jnp.allclose(out, ref, rtol=1e-5, atol=1e-5), (out, ref)

    # Case 2: ragged last tile (n=18, tile_rows=8) + normalize_length=True.
    batch2, seqlen2, size2 = 2, 9, 160
    kx2, kt2 = jax.random.split(jax.random.PRNGKey(1))
    x2 = jax.random.normal(kx2, (batch2, seqlen2, size2), dtype=jnp.float32)
    t2 = jax.random.randint(kt2, (batch2, seqlen2), 0, size2, dtype=jnp.int32)
    t2 = t2.at[1, :3].set(padding_idx)
    out2 = label_smoothing_loss(x2, t2, size=size2, padding_idx=padding_idx,
                                smoothing=smoothing, normalize_length=True,
                                tile_rows=8)
    out2 = jax.block_until_ready(out2)
    ref2 = _reference_loss(x2, t2, size2, padding_idx, smoothing, True)
    assert jnp.allclose(out2, ref2, rtol=1e-5, atol=1e-5), (out2, ref2)

    # Case 3: bf16 logits exercise the input-dtype max / one-hot path.
    x3 = x2.astype(jnp.bfloat16)
    out3 = label_smoothing_loss(x3, t2, size=size2, padding_idx=padding_idx,
                                smoothing=smoothing, normalize_length=False)
    out3 = jax.block_until_ready(out3)
    ref3 = _reference_loss(x3, t2, size2, padding_idx, smoothing, False)
    assert jnp.allclose(out3, ref3, rtol=2e-2, atol=2e-2), (out3, ref3)

    print("KERNEL_OK")
</pallas_src>

<mosaic_0001>
module attributes {stable_mosaic.version = 11 : i64} {
  func.func @_label_smoothing_kernel(%arg0: i32, %arg1: memref<8x1xi32, #tpu.memory_space<vmem>>, %arg2: memref<8x32xf32, #tpu.memory_space<vmem>>, %arg3: memref<1x8x128xf32, #tpu.memory_space<vmem>>) attributes {dimension_semantics = [#tpu.dimension_semantics<parallel>], iteration_bounds = array<i64: 2>, scalar_prefetch = 0 : i64, scratch_operands = 0 : i64, tpu.core_type = #tpu.core_type<tc>, window_params = [{transform_indices = @transform_0, window_bounds = array<i64: 8, 1>}, {transform_indices = @transform_1, window_bounds = array<i64: 8, 32>}, {transform_indices = @transform_2, window_bounds = array<i64: 1, 8, 128>}]} {
    %c0 = arith.constant 0 : index
    %c0_0 = arith.constant 0 : index
    %0 = vector.load %arg2[%c0, %c0_0] : memref<8x32xf32, #tpu.memory_space<vmem>>, vector<8x32xf32>
    %c0_1 = arith.constant 0 : index
    %c0_2 = arith.constant 0 : index
    %1 = vector.load %arg1[%c0_1, %c0_2] : memref<8x1xi32, #tpu.memory_space<vmem>>, vector<8x1xi32>
    %cst = arith.constant dense<0xFF800000> : vector<8xf32>
    %2 = vector.multi_reduction <maximumf>, %0, %cst [1] : vector<8x32xf32> to vector<8xf32>
    %3 = vector.shape_cast %2 : vector<8xf32> to vector<8x1xf32>
    %4 = vector.broadcast %3 : vector<8x1xf32> to vector<8x32xf32>
    %5 = arith.subf %0, %4 : vector<8x32xf32>
    %6 = math.exp %5 : vector<8x32xf32>
    %cst_3 = arith.constant dense<0.000000e+00> : vector<8xf32>
    %7 = vector.multi_reduction <add>, %6, %cst_3 [1] : vector<8x32xf32> to vector<8xf32>
    %8 = vector.shape_cast %7 : vector<8xf32> to vector<8x1xf32>
    %9 = math.log %8 : vector<8x1xf32>
    %cst_4 = arith.constant dense<0.000000e+00> : vector<8xf32>
    %10 = vector.multi_reduction <add>, %5, %cst_4 [1] : vector<8x32xf32> to vector<8xf32>
    %11 = vector.shape_cast %10 : vector<8xf32> to vector<8x1xf32>
    %cst_5 = arith.constant 3.200000e+01 : f32
    %12 = vector.broadcast %cst_5 : f32 to vector<8x1xf32>
    %13 = arith.mulf %12, %9 : vector<8x1xf32>
    %14 = arith.subf %11, %13 : vector<8x1xf32>
    %15 = tpu.iota {dimensions = array<i32: 1>} : vector<8x32xi32>
    %16 = vector.broadcast %1 : vector<8x1xi32> to vector<8x32xi32>
    %17 = arith.cmpi eq, %15, %16 : vector<8x32xi32>
    %cst_6 = arith.constant 0.000000e+00 : f32
    %18 = vector.broadcast %cst_6 : f32 to vector<8x32xf32>
    %19 = arith.select %17, %0, %18 : vector<8x32xi1>, vector<8x32xf32>
    %cst_7 = arith.constant dense<0.000000e+00> : vector<8xf32>
    %20 = vector.multi_reduction <add>, %19, %cst_7 [1] : vector<8x32xf32> to vector<8xf32>
    %21 = vector.shape_cast %20 : vector<8xf32> to vector<8x1xf32>
    %22 = arith.subf %21, %3 : vector<8x1xf32>
    %23 = arith.subf %22, %9 : vector<8x1xf32>
    %c-1_i32 = arith.constant -1 : i32
    %24 = vector.broadcast %c-1_i32 : i32 to vector<8x1xi32>
    %25 = arith.cmpi eq, %1, %24 : vector<8x1xi32>
    %cst_8 = arith.constant 0.0032258064 : f32
    %26 = vector.broadcast %cst_8 : f32 to vector<8x1xf32>
    %27 = arith.mulf %26, %14 : vector<8x1xf32>
    %cst_9 = arith.constant -0.668481708 : f32
    %28 = vector.broadcast %cst_9 : f32 to vector<8x1xf32>
    %29 = arith.subf %28, %27 : vector<8x1xf32>
    %cst_10 = arith.constant 0.896774172 : f32
    %30 = vector.broadcast %cst_10 : f32 to vector<8x1xf32>
    %31 = arith.mulf %30, %23 : vector<8x1xf32>
    %32 = arith.subf %29, %31 : vector<8x1xf32>
    %cst_11 = arith.constant 0.000000e+00 : f32
    %33 = vector.broadcast %cst_11 : f32 to vector<8x1xf32>
    %34 = arith.select %25, %33, %32 : vector<8x1xi1>, vector<8x1xf32>
    %35 = vector.shape_cast %34 : vector<8x1xf32> to vector<1x8x1xf32>
    %cst_12 = arith.constant dense<0.000000e+00> : vector<1xf32>
    %36 = vector.multi_reduction <add>, %35, %cst_12 [1, 2] : vector<1x8x1xf32> to vector<1xf32>
    %37 = vector.shape_cast %36 : vector<1xf32> to vector<1x1x1xf32>
    %38 = vector.extract %37[0, 0, 0] : f32 from vector<1x1x1xf32>
    %cst_13 = arith.constant 0.000000e+00 : f32
    %cst_14 = arith.constant 1.000000e+00 : f32
    %39 = vector.broadcast %cst_13 : f32 to vector<8x1xf32>
    %40 = vector.broadcast %cst_14 : f32 to vector<8x1xf32>
    %41 = arith.select %25, %39, %40 : vector<8x1xi1>, vector<8x1xf32>
    %42 = vector.shape_cast %41 : vector<8x1xf32> to vector<1x8x1xf32>
    %cst_15 = arith.constant dense<0.000000e+00> : vector<1xf32>
    %43 = vector.multi_reduction <add>, %42, %cst_15 [1, 2] : vector<1x8x1xf32> to vector<1xf32>
    %44 = vector.shape_cast %43 : vector<1xf32> to vector<1x1x1xf32>
    %45 = vector.extract %44[0, 0, 0] : f32 from vector<1x1x1xf32>
    %46 = tpu.iota {dimensions = array<i32: 1>} : vector<1x8x128xi32>
    %47 = tpu.iota {dimensions = array<i32: 2>} : vector<1x8x128xi32>
    %c0_i32 = arith.constant 0 : i32
    %48 = vector.broadcast %c0_i32 : i32 to vector<1x8x128xi32>
    %49 = arith.cmpi eq, %46, %48 : vector<1x8x128xi32>
    %c0_i32_16 = arith.constant 0 : i32
    %50 = vector.broadcast %c0_i32_16 : i32 to vector<1x8x128xi32>
    %51 = arith.cmpi eq, %47, %50 : vector<1x8x128xi32>
    %52 = arith.andi %49, %51 : vector<1x8x128xi1>
    %cst_17 = arith.constant 0.000000e+00 : f32
    %53 = vector.broadcast %38 : f32 to vector<1x8x128xf32>
    %54 = vector.broadcast %cst_17 : f32 to vector<1x8x128xf32>
    %55 = arith.select %52, %53, %54 : vector<1x8x128xi1>, vector<1x8x128xf32>
    %c1_i32 = arith.constant 1 : i32
    %56 = vector.broadcast %c1_i32 : i32 to vector<1x8x128xi32>
    %57 = arith.cmpi eq, %46, %56 : vector<1x8x128xi32>
    %c0_i32_18 = arith.constant 0 : i32
    %58 = vector.broadcast %c0_i32_18 : i32 to vector<1x8x128xi32>
    %59 = arith.cmpi eq, %47, %58 : vector<1x8x128xi32>
    %60 = arith.andi %57, %59 : vector<1x8x128xi1>
    %61 = vector.broadcast %45 : f32 to vector<1x8x128xf32>
    %62 = arith.select %60, %61, %55 : vector<1x8x128xi1>, vector<1x8x128xf32>
    %c0_19 = arith.constant 0 : index
    %c0_20 = arith.constant 0 : index
    %c0_21 = arith.constant 0 : index
    %63 = vector.load %arg3[%c0_19, %c0_20, %c0_21] : memref<1x8x128xf32, #tpu.memory_space<vmem>>, vector<1x8x128xf32>
    tpu.vector_store %arg3[%c0_19, %c0_20, %c0_21], %62 {strides = array<i32>} : memref<1x8x128xf32, #tpu.memory_space<vmem>>, vector<1x8x128xf32>,
    return
  }
  func.func @transform_0(%arg0: i32) -> (i32, i32) {
    %c0_i32 = arith.constant 0 : i32
    %c0_i32_0 = arith.constant 0 : i32
    return %arg0, %c0_i32 : i32, i32
  }
  func.func @transform_1(%arg0: i32) -> (i32, i32) {
    %c0_i32 = arith.constant 0 : i32
    %c0_i32_0 = arith.constant 0 : i32
    return %arg0, %c0_i32 : i32, i32
  }
  func.func @transform_2(%arg0: i32) -> (i32, i32, i32) {
    %c0_i32 = arith.constant 0 : i32
    %c0_i32_0 = arith.constant 0 : i32
    %c0_i32_1 = arith.constant 0 : i32
    return %arg0, %c0_i32, %c0_i32_0 : i32, i32, i32
  }
}

</mosaic_0001>

<bundles_post_ra>
// kernel: tpu_custom_call.1
= control target key start
LH: loop header
LB: loop body
LE: loop exit
PB: predicated region body
PF: predicated region fallthrough
CT: control target
= control target key end

     0   :  { %7 = vsyncpa [#allocation3], 0  ;;  %s562_s0 = inlined_call_operand.vmem [shape: s32[16,1], index: 0, kind: input, shape index: {}]   ;;  %s563_s1 = inlined_call_operand.vmem [shape: f32[16,32], index: 1, kind: input, shape index: {}]   ;;  %s564_s2 = inlined_call_operand.hbm [shape: f32[2,8,128], index: 2, kind: output, shape index: {}]  }
   0x1   :  { %9 = vsyncpa [#allocation3 + $0x1], 0  ;;  %s455_s9 = smov 0   ;;  %s457_s10 = smov 0  }
   0x2   :  { %s459_s11 = smov 0   ;;  %s461_s12 = smov 0  }
   0x3 LB: > { %s476_s13 = sadd.s32 4294967295, %s435_s12   ;;  %s312_s14 = sadd.s32 4294967294, %s435_s12   ;;  %s435_s12 = sphi %s461_s12, %s570_s12   ;;  %s431_s11 = sphi %s459_s11, %s569_s11   ;;  %s427_s10 = sphi %s457_s10, %s568_s10   ;;  %s423_s9 = sphi %s455_s9, %s567_s9  }
   0x4   : > { %s480_s15 = sadd.s32 1, %s435_s12   ;;  %s74_s16 = sadd.s32 1, %s431_s11 }
   0x5   : > { %s71_s17 = ssub.s32 %s435_s12, %s480_s15  ;;  %p84_p0 = scmp.ne.s32.totalorder %s431_s11, %s427_s10 }
   0x6   : > { %p72_p1 = scmp.eq.s32.totalorder %s71_s17, 0  ;;  %p85_p2 = scmp.eq.s32.totalorder %s476_s13, 1 }
   0x7   : > { %p90_p3 = scmp.ne.s32.totalorder %s427_s10, %s423_s9  ;;  %p91_p4 = scmp.eq.s32.totalorder %s312_s14, 1 }
   0x8   : > { %s491_s18 = scalar_select %p72_p1, %s431_s11, %s74_s16  }
   0x9   : > { %p493_p5 = por %p85_p2, %p84_p0  ;;  %p497_p6 = por %p91_p4, %p90_p3 }
   0xa   : > { %p315_p7 = scmp.ge.s32.totalorder %s435_s12, 1  ;;  %p123_p8 = scmp.lt.s32.totalorder %s435_s12, 3 }
   0xc   : > { %p124_p9 = pnand %p315_p7, %p123_p8 }
   0xd   : > { %p148_p10 = scmp.lt.s32.totalorder (!%p124_p9), %s476_s13, 1  ;;  %v437_v0 = vmov (!%p124_p9), 0   ;;  %vm158_vm0 = vcmask (!%p124_p9), 261120   ;;  %v175_v7 = vlaneseq (!%p124_p9)  ;;  %vm193_vm3 = vcmask (!%p124_p9), 7168   ;;  %s145_s29 = sand.u32 (!%p124_p9), 1, %s427_s10  }
   0xe   : > { %127 = sbr.rel (%p124_p9) target bundleno = 576 (0x240), region = 28  ;;  %368 = vset.pattern.permute.xlu0 (!%p124_p9), %v437_v0  ;;  %v438_v29 = vmov (!%p124_p9), 1.0   ;;  %s316_s30 = sshll.u32 (!%p124_p9), %s145_s29, 3 }
   0xf   : > { %v176_v8 = vand.u32 (!%p124_p9), 127, %v175_v7  ;;  %v216_v47 = vshrl.u32 (!%p124_p9), %v175_v7, 7  ;;  %s320_s4 = sshll.u32 (!%p124_p9), %s476_s13, 7  ;;  %s147_s5 = scalar_lea.vmem (!%p124_p9), [#allocation2], %s316_s30 }
  0x10   : > { %s241_s6 = sshll.u32 (!%p124_p9), %s147_s5, 4  ;;  %s520_s16 = scalar_lea.hbm (!%p124_p9), %s564_s2, %s320_s4  ;;  %s522_s6 = int_to_ptr.vmem [resolvable:$true] %s241_s6 }
  0x11   : > { %vm217_vm4 = vcmp.eq.s32.totalorder (!%p124_p9), %v216_v47, 0  ;;  %vm218_vm5 = vcmp.eq.s32.totalorder (!%p124_p9), %v176_v8, 0  ;;  %vm222_vm6 = vcmp.eq.s32.totalorder (!%p124_p9), %v216_v47, 1  ;;  %s228_s17 = scalar_lea.sflag (!%p124_p9), [#allocation3], %s145_s29 }
  0x12   : > { %vm219_vm7 = vmand (!%p124_p9), %vm217_vm4, %vm218_vm5 }
  0x13   : > { %vm223_vm8 = vmand (!%p124_p9), %vm222_vm6, %vm218_vm5 }
  0x15   : > { %s149_s21 = scalar_select %p148_p10, %s476_s13, 1 }
  0x16   : > { %s373_s13 = scalar_lea.vmem %s522_s6, 128 }
  0x17   : > { %s317_s22 = sshll.u32 %s149_s21, 3  ;;  %p374_p11 = scmp.ne.s32.totalorder %s522_s6, %s373_s13 }
  0x18   : > { %s155_s25 = scalar_lea.vmem %s563_s1, %s317_s22  ;;  %s151_s28 = scalar_lea.vmem %s562_s0, %s317_s22 }
  0x19   : > { %v156_v1 = vld [vmem:[%s155_s25] sm:$0xff]  ;;  %p375_p12 = pnand %p374_p11, %p493_p5  ;;  %s439_s21 = smov [#allocation2]  }
  0x1a   : > { %v159_v2 = vsel %vm158_vm0, %v156_v1, -inf  ;;  %v157_v3 = vld [vmem:[%s151_s28] sm:$0xff]  ;;  %s377_s22 = sshll.u32 %s439_s21, 4  ;;  %s378_s22 = int_to_ptr.vmem [resolvable:$false] %s377_s22 }
  0x1b   : > { %160 = vmax.xlane.f32.xlu0 %v159_v2  ;;  %vm187_vm2 = vcmp.eq.s32.totalorder %v157_v3, 4294967295  ;;  %p376_p13 = pneg %p375_p12  ;;  %s379_s23 = scalar_lea.vmem %s378_s22, 256 }
  0x1c   : > { %v204_v30 = vsel %vm187_vm2, 0.0, %v438_v29  ;;  %p380_p0 = scmp.lt.s32.totalorder %s522_s6, %s378_s22  ;;  %p381_p1 = scmp.lt.s32.totalorder %s379_s23, %s373_s13 }
  0x1d   : > { %v205_v32 = vsel %vm193_vm3, %v204_v30, 0.0 }
  0x1e   : > { %p382_p2 = por %p381_p1, %p380_p0 }
  0x20   : > { %p383_p3 = pnand %p382_p2, %p376_p13 }
  0x31   : > { %178 = vperm.xlu0 %368, %v157_v3  }
  0xa8   : > { %v161_v4 = vpop.xlane.xlu0 %160 }
  0xa9   : > { %v162_v5 = vsub.f32 %v156_v1, %v161_v4 }
  0xab   : > { %v163_v6 = vmul.f32 1.442695, %v162_v5  ;;  %v170_v13 = vsel %vm158_vm0, %v162_v5, 0.0 }
  0xad   : > { %369 = vpow2.f32 %v163_v6 }
  0xb0   : > { %v179_v9 = vpop.permute.xlu0 %178 }
  0xb1   : > { %vm180_vm1 = vcmp.eq.s32.totalorder %v176_v8, %v179_v9 }
  0xb2   : > { %v181_v12 = vsel %vm180_vm1, %v156_v1, 0.0 }
  0xb3   : > { %v182_v14 = vsel %vm158_vm0, %v181_v12, 0.0 }
  0xb7   : > { %v370_v10 = vpop.eup %369 }
  0xb8   : > { %v165_v11 = vsel %vm158_vm0, %v370_v10, 0.0 }
  0xb9   : > { %166 = vadd.xlane.f32.xlu1 %v165_v11 }
  0xbd   : > { %171 = vadd.xlane.f32.xlu1 %v170_v13 }
  0xc1   : > { %183 = vadd.xlane.f32.xlu1 %v182_v14 }
 0x146   : > { %v167_v15 = vpop.xlane.xlu1 %166 }
 0x147   : > { %371 = vlog2.f32 %v167_v15 }
 0x14a   : > { %v172_v16 = vpop.xlane.xlu1 %171 }
 0x14e   : > { %v184_v18 = vpop.xlane.xlu1 %183 }
 0x14f   : > { %v185_v21 = vsub.f32 %v184_v18, %v161_v4 }
 0x151   : > { %v372_v17 = vpop.eup %371 }
 0x152   : > { %v169_v19 = vmul.f32 0.6931472, %v372_v17 }
 0x154   : > { %v173_v20 = vmul.f32 32.0, %v169_v19  ;;  %v186_v23 = vsub.f32 %v185_v21, %v169_v19 }
 0x156   : > { %v174_v22 = vsub.f32 %v172_v16, %v173_v20  ;;  %v190_v26 = vmul.f32 0.8967742, %v186_v23 }
 0x158   : > { %v188_v24 = vmul.f32 0.0032258064, %v174_v22 }
 0x15a   : > { %v189_v25 = vsub.f32 -0.6684817, %v188_v24 }
 0x15c   : > { %v191_v27 = vsub.f32 %v189_v25, %v190_v26 }
 0x15e   : > { %v192_v28 = vsel %vm187_vm2, 0.0, %v191_v27 }
 0x15f   : > { %v194_v31 = vsel %vm193_vm3, %v192_v28, 0.0 }
 0x160   : > { %195 = vadd.xlane.f32.xlu1 %v194_v31 }
 0x164   : > { %206 = vadd.xlane.f32.xlu1 %v205_v32 }
 0x1ed   : > { %v196_v33 = vpop.xlane.xlu1 %195 }
 0x1ee   : > { %v197_v34 = vrot.slane %v196_v33, 4 }
 0x1f0   : > { %v198_v35 = vadd.f32 %v197_v34, %v196_v33 }
 0x1f1   : > { %v207_v36 = vpop.xlane.xlu1 %206 }
 0x1f2   : > { %v199_v37 = vrot.slane %v198_v35, 2  ;;  %v208_v38 = vrot.slane %v207_v36, 4 }
 0x1f4   : > { %v209_v39 = vadd.f32 %v208_v38, %v207_v36  ;;  %v200_v40 = vadd.f32 %v199_v37, %v198_v35 }
 0x1f6   : > { %v210_v41 = vrot.slane %v209_v39, 2  ;;  %v201_v42 = vrot.slane %v200_v40, 1 }
 0x1f8   : > { %v211_v43 = vadd.f32 %v210_v41, %v209_v39  ;;  %v202_v44 = vadd.f32 %v201_v42, %v200_v40 }
 0x1fa   : > { %323 = vpush %v202_v44  ;;  %v212_v45 = vrot.slane %v211_v43, 1 }
 0x1fc   : > { %v213_v46 = vadd.f32 %v212_v45, %v211_v43 }
 0x1fe   : > { %325 = vpush %v213_v46 }
 0x22b   : > { %s324_s3 = spop %323 }
 0x22c   : > { %v220_v48 = vstv %s324_s3 }
 0x22d   : > { %v221_v49 = vsel %vm219_vm7, %v220_v48, 0.0 }
 0x22f   : > { %s326_s7 = spop %325 }
 0x230   : > { %v224_v50 = vstv %s326_s7 }
 0x231   : > { %v225_v51 = vsel %vm223_vm8, %v224_v50, %v221_v49 }
 0x232   : > { %226 = vst [vmem:[%s147_s5] sm:$0xff] %v225_v51 }
 0x233   : > { %386 = shalt.err (!%p383_p3)
}
 0x234   : > { %s387_s24 = scalar_lea.hbm %s520_s16, 128  ;;  %s391_s27 = scalar_lea.hbm %s564_s2, 256 }
 0x235   : > { %p388_p4 = scmp.ne.s32.totalorder %s520_s16, %s387_s24  ;;  %p392_p9 = scmp.lt.u32.totalorder %s520_s16, %s564_s2 }
 0x236   : > { %p393_p10 = scmp.lt.u32.totalorder %s391_s27, %s387_s24  ;;  %p395_p12 = scmp.lt.u32.totalorder %s387_s24, %s520_s16 }
 0x237   : > { %p389_p7 = pnand %p388_p4, %p493_p5 }
 0x238   : > { %p394_p11 = por %p393_p10, %p392_p9 }
 0x239   : > { %p390_p8 = pneg %p389_p7 }
 0x23a   : > { %p396_p13 = por %p395_p12, %p394_p11 }
 0x23c   : > { %p397_p0 = pnand %p396_p13, %p390_p8 }
 0x23e   : > { %400 = shalt.err (!%p397_p0)
}
 0x23f   : > { %327 = dma.vmem_to_hbm [thread:$0]  (%p493_p5), %s522_s6, 128, %s520_s16, %s228_s17  }
 0x240 PF: > { %p333_p1 = scmp.ge.s32.totalorder %s435_s12, 2  ;;  %s253_s30 = sand.u32 1, %s423_s9  }
 0x241   : > { %s254_s3 = scalar_lea.sflag [#allocation3], %s253_s30 }
 0x242   : > { %p330_p2 = pnand %p333_p1, %p497_p6 }
 0x244   : > { %418 = dma.done.wait (!%p330_p2), %s254_s3, 128  }
 0x245   : > { %420 = vsyncadd (!%p330_p2), %s254_s3, 4294967168  ;;  %p12_p3 = scmp.ge.s32.totalorder %s480_s15, 4   ;;  %s567_s9 = smov %s427_s10 }
 0x246   : > { %s568_s10 = smov %s431_s11  ;;  %s569_s11 = smov %s491_s18 }
 0x247   : > { %s570_s12 = smov %s480_s15  ;;  %14 = sbr.rel (!%p12_p3) target bundleno = 3 (0x3), region = 66 }
 0x24e   :  { %259 = vsyncpa [#allocation3], 1 }
 0x24f   :  { %261 = vsyncpa [#allocation3 + $0x1], 1 }

</bundles_post_ra>
